<compile_context>
chip_gen: v7x
topology: tpu7x:2x2x1
jax: 0.10.0
libtpu: 0.0.40
codegen_flags: <defaults>
</compile_context>

<pallas_src>
import functools

import jax
import jax.numpy as jnp
from jax.experimental import pallas as pl
from jax.experimental.pallas import tpu as pltpu


def _kl_align_kernel(s_ref, t_ref, out_ref, acc_ref, *, inv_tau, base_class,
                     n_rows, class_axis, batch_tile, tiles_per_split,
                     use_class_mask, use_batch_mask):
    """One batch tile of sum_{rows, c < base_class} p_T * (log p_T - log p_S).

    class_axis == 1: block is (batch_tile, c_blk)      (classes on lanes)
    class_axis == 0: block is (base_class, batch_tile) (classes on sublanes,
                     batch rows lane-dense -- used when base_class is tiny)
    """
    p = pl.program_id(0)          # "parallel" split (megacore on v7x)
    i = pl.program_id(1)          # "arbitrary" batch-tile axis

    @pl.when(i == 0)
    def _():
        acc_ref[...] = jnp.zeros_like(acc_ref)

    s = s_ref[...].astype(jnp.float32)
    t = t_ref[...].astype(jnp.float32)
    if inv_tau != 1.0:            # static (trace-time) check; tau is Python
        s = s * jnp.float32(inv_tau)
        t = t * jnp.float32(inv_tau)

    neg_big = jnp.float32(-1e30)
    if use_class_mask:
        # Narrow mask, broadcast along the batch axis.  exp(neg_big - max)
        # underflows to 0, so masked class lanes need no further scrubbing.
        cshape = (1, s.shape[1]) if class_axis == 1 else (s.shape[0], 1)
        cidx = jax.lax.broadcasted_iota(jnp.int32, cshape, class_axis)
        cmask = cidx < base_class
        s = jnp.where(cmask, s, neg_big)
        t = jnp.where(cmask, t, neg_big)

    t_max = jnp.max(t, axis=class_axis, keepdims=True)
    s_max = jnp.max(s, axis=class_axis, keepdims=True)
    t_shift = t - t_max
    s_shift = s - s_max
    t_exp = jnp.exp(t_shift)
    s_exp = jnp.exp(s_shift)
    t_sum = jnp.sum(t_exp, axis=class_axis, keepdims=True)
    s_sum = jnp.sum(s_exp, axis=class_axis, keepdims=True)

    # p_T * (log p_T - log p_S) summed over classes; the teacher normalizer is
    # factored into one narrow approximate reciprocal (EUP slot).
    diff = (t_shift - jnp.log(t_sum)) - (s_shift - jnp.log(s_sum))
    kl_num = jnp.sum(t_exp * diff, axis=class_axis, keepdims=True)
    kl_part = kl_num * pl.reciprocal(t_sum, approx=True)      # narrow per-row

    if use_batch_mask:
        # Single masked select on the narrow per-row result: kills padded /
        # duplicated remainder rows (including any NaN garbage they produced).
        batch_axis = 1 - class_axis
        bidx = jax.lax.broadcasted_iota(jnp.int32, kl_part.shape, batch_axis)
        g = (p * tiles_per_split + i) * batch_tile + bidx
        kl_part = jnp.where(g < n_rows, kl_part, jnp.float32(0.0))

    acc_ref[...] += kl_part        # narrow f32 VMEM vector accumulator

    @pl.when(i == pl.num_programs(1) - 1)
    def _():
        # One cross-lane/sublane reduce per split, outside the hot loop.
        out_ref[...] = jnp.full(out_ref.shape, jnp.sum(acc_ref[...]),
                                dtype=out_ref.dtype)


def logit_know_align_loss(preds_S, preds_T, *, tau=1.0, reduction='batchmean',
                          loss_weight=1.0, base_class=3,
                          max_batch_tile=None,
                          vmem_budget_bytes=12 * 1024 * 1024):
    """JAX/Pallas equivalent of LogitKnowAlignLoss.forward.

    Accepts (N, C) or (N, C, H, W) predictions (the latter is flattened to
    (N*H*W, C); softmax is over the class axis either way).
    """
    assert preds_S.shape == preds_T.shape
    batch_n = preds_S.shape[0]        # F.kl_div 'batchmean' divides by this

    if preds_S.ndim == 4:
        n4, c4, h4, w4 = preds_S.shape
        preds_S = jnp.moveaxis(preds_S, 1, -1).reshape(n4 * h4 * w4, c4)
        preds_T = jnp.moveaxis(preds_T, 1, -1).reshape(n4 * h4 * w4, c4)
    assert preds_S.ndim == 2
    n, c = preds_S.shape
    assert 1 <= base_class <= c

    itemsize = jnp.dtype(preds_S.dtype).itemsize
    lane_dense = base_class <= 8

    if lane_dense:
        # Tiny class count: slice to exactly base_class and transpose so that
        # classes land on sublanes and batch rows on lanes (lane-dense).
        s_in = preds_S[:, :base_class].T          # (base_class, n)
        t_in = preds_T[:, :base_class].T
        class_axis = 0
        phys_row_bytes = 8 * itemsize             # sublane pad to 8
        max_tile = vmem_budget_bytes // (4 * phys_row_bytes)
        if max_batch_tile is not None:
            max_tile = min(max_tile, max_batch_tile)
        max_tile = max(128, min((max_tile // 128) * 128, 32 * 1024))
        batch_tile = n if n <= max_tile else max_tile
        block_shape = (base_class, batch_tile)
        use_class_mask = False                    # already sliced exactly
    else:
        # Wide class count: classes on lanes; DMA only the first 128-lane
        # multiple covering base_class (not all C columns).
        s_in, t_in = preds_S, preds_T
        class_axis = 1
        needed = 128 * pl.cdiv(int(base_class), 128)
        c_blk = c if needed >= c else needed
        phys_row_bytes = (128 * pl.cdiv(c_blk, 128)) * itemsize
        max_tile = vmem_budget_bytes // (4 * phys_row_bytes)
        if max_batch_tile is not None:
            max_tile = min(max_tile, max_batch_tile)
        max_tile = max(8, min((max_tile // 8) * 8, 4096))
        batch_tile = n if n <= max_tile else max_tile
        block_shape = (batch_tile, c_blk)
        use_class_mask = base_class < c_blk       # statically skipped if equal

    total_tiles = pl.cdiv(n, batch_tile)
    n_splits = 2 if total_tiles >= 2 else 1       # v7x megacore split
    tiles_per_split = pl.cdiv(total_tiles, n_splits)
    use_batch_mask = (n_splits * tiles_per_split * batch_tile) != n
    max_tile_idx = total_tiles - 1

    def in_map(pi, ii):
        # Clamp so padded tiles of the second split re-read a valid tile;
        # their rows are zeroed by the batch mask in the kernel.
        t_idx = jnp.minimum(pi * tiles_per_split + ii, max_tile_idx)
        return (0, t_idx) if class_axis == 0 else (t_idx, 0)

    acc_shape = (1, batch_tile) if class_axis == 0 else (batch_tile, 1)

    kernel = functools.partial(
        _kl_align_kernel,
        inv_tau=1.0 / float(tau),
        base_class=int(base_class),
        n_rows=n,
        class_axis=class_axis,
        batch_tile=batch_tile,
        tiles_per_split=tiles_per_split,
        use_class_mask=use_class_mask,
        use_batch_mask=use_batch_mask,
    )

    partials = pl.pallas_call(
        kernel,
        out_shape=jax.ShapeDtypeStruct((n_splits, 8, 128), jnp.float32),
        grid=(n_splits, tiles_per_split),
        in_specs=[pl.BlockSpec(block_shape, in_map),
                  pl.BlockSpec(block_shape, in_map)],
        out_specs=pl.BlockSpec((1, 8, 128), lambda pi, ii: (pi, 0, 0)),
        scratch_shapes=[pltpu.VMEM(acc_shape, jnp.float32)],
        compiler_params=pltpu.CompilerParams(
            dimension_semantics=("parallel", "arbitrary"),
            vmem_limit_bytes=32 * 1024 * 1024),
    )(s_in, t_in)

    kl_sum = jnp.sum(partials[:, 0, 0])

    if reduction == 'batchmean':
        reduced = kl_sum / batch_n            # PyTorch: / input.size(0)
    elif reduction == 'sum':
        reduced = kl_sum
    elif reduction == 'mean':
        reduced = kl_sum / (n * base_class)   # total sliced-element count
    else:
        # TODO(synk): reduction='none' returns a per-element tensor; not wired
        # into this scalar-output kernel.
        raise NotImplementedError(f"reduction={reduction!r}")

    return loss_weight * (float(tau) ** 2) * reduced


def _reference(preds_S, preds_T, *, tau=1.0, reduction='batchmean',
               loss_weight=1.0, base_class=3):
    """Pure-JAX reference mirroring the PyTorch module (works for 2D and 4D)."""
    s = preds_S[:, :base_class].astype(jnp.float32) / tau
    t = preds_T[:, :base_class].astype(jnp.float32) / tau
    p_t = jax.nn.softmax(t, axis=1)
    log_p_t = jax.nn.log_softmax(t, axis=1)
    log_p_s = jax.nn.log_softmax(s, axis=1)
    kl = p_t * (log_p_t - log_p_s)
    if reduction == 'batchmean':
        red = jnp.sum(kl) / preds_S.shape[0]
    elif reduction == 'sum':
        red = jnp.sum(kl)
    elif reduction == 'mean':
        red = jnp.mean(kl)
    else:
        raise NotImplementedError(reduction)
    return loss_weight * (tau ** 2) * red


if __name__ == "__main__":
    key = jax.random.PRNGKey(0)
    ks = jax.random.split(key, 12)

    def check(out, ref, rtol=2e-3, atol=2e-4):
        out = jax.block_until_ready(out)
        assert jnp.allclose(out, ref, rtol=rtol, atol=atol), (out, ref)

    # 1) Basic (N, C), default base_class=3 (lane-dense path), batchmean.
    s1 = jax.random.normal(ks[0], (2, 4), dtype=jnp.float32)
    t1 = jax.random.normal(ks[1], (2, 4), dtype=jnp.float32)
    check(logit_know_align_loss(s1, t1), _reference(s1, t1))

    # 2) Tiny base_class with wide C (lane-dense slice + transpose), tau=2, sum.
    s2 = jax.random.normal(ks[2], (8, 256), dtype=jnp.float32)
    t2 = jax.random.normal(ks[3], (8, 256), dtype=jnp.float32)
    check(logit_know_align_loss(s2, t2, tau=2.0, reduction='sum',
                                loss_weight=0.5),
          _reference(s2, t2, tau=2.0, reduction='sum', loss_weight=0.5))

    # 3) Wide-class path (base_class > 8) with a static class mask.
    s3 = jax.random.normal(ks[4], (16, 256), dtype=jnp.float32)
    t3 = jax.random.normal(ks[5], (16, 256), dtype=jnp.float32)
    check(logit_know_align_loss(s3, t3, base_class=160),
          _reference(s3, t3, base_class=160))

    # 4) Wide-class path: multi-tile, 2-way split, remainder masking, 'mean'.
    s4 = jax.random.normal(ks[6], (20, 16), dtype=jnp.float32)
    t4 = jax.random.normal(ks[7], (20, 16), dtype=jnp.float32)
    check(logit_know_align_loss(s4, t4, base_class=12, reduction='mean',
                                max_batch_tile=8),
          _reference(s4, t4, base_class=12, reduction='mean'))

    # 5) Lane-dense path: multi-tile, 2-way split, remainder masking.
    s5 = jax.random.normal(ks[8], (300, 4), dtype=jnp.float32)
    t5 = jax.random.normal(ks[9], (300, 4), dtype=jnp.float32)
    check(logit_know_align_loss(s5, t5, max_batch_tile=128),
          _reference(s5, t5))

    # 6) NCHW input (N, C, H, W); batchmean divides by original N.
    s6 = jax.random.normal(ks[10], (2, 4, 3, 5), dtype=jnp.float32)
    t6 = jax.random.normal(ks[11], (2, 4, 3, 5), dtype=jnp.float32)
    check(logit_know_align_loss(s6, t6), _reference(s6, t6))

    # 7) bf16 inputs kept bf16 through the pallas_call boundary.
    s7 = s1.astype(jnp.bfloat16)
    t7 = t1.astype(jnp.bfloat16)
    check(logit_know_align_loss(s7, t7), _reference(s7, t7),
          rtol=5e-3, atol=5e-4)

    print("KERNEL_OK")
</pallas_src>

<mosaic_0001>
module attributes {stable_mosaic.version = 11 : i64} {
  func.func @_kl_align_kernel(%arg0: i32, %arg1: i32, %arg2: memref<3x2xf32, #tpu.memory_space<vmem>>, %arg3: memref<3x2xf32, #tpu.memory_space<vmem>>, %arg4: memref<1x8x128xf32, #tpu.memory_space<vmem>>, %arg5: memref<1x2xf32, #tpu.memory_space<vmem>>) attributes {dimension_semantics = [#tpu.dimension_semantics<parallel>, #tpu.dimension_semantics<arbitrary>], iteration_bounds = array<i64: 1, 1>, scalar_prefetch = 0 : i64, scratch_operands = 1 : i64, tpu.core_type = #tpu.core_type<tc>, window_params = [{transform_indices = @transform_0, window_bounds = array<i64: 3, 2>}, {transform_indices = @transform_1, window_bounds = array<i64: 3, 2>}, {transform_indices = @transform_2, window_bounds = array<i64: 1, 8, 128>}]} {
    %c0_i32 = arith.constant 0 : i32
    %0 = arith.cmpi eq, %arg1, %c0_i32 : i32
    %1 = arith.extui %0 : i1 to i32
    %c0_i32_0 = arith.constant 0 : i32
    %2 = arith.cmpi ne, %1, %c0_i32_0 : i32
    scf.if %2 {
      %cst_14 = arith.constant 0.000000e+00 : f32
      %37 = vector.broadcast %cst_14 : f32 to vector<1x2xf32>
      %c0_15 = arith.constant 0 : index
      %c0_16 = arith.constant 0 : index
      %38 = vector.load %arg5[%c0_15, %c0_16] : memref<1x2xf32, #tpu.memory_space<vmem>>, vector<1x2xf32>
      tpu.vector_store %arg5[%c0_15, %c0_16], %37 {strides = array<i32>} : memref<1x2xf32, #tpu.memory_space<vmem>>, vector<1x2xf32>,
    } else {
    }
    %c0 = arith.constant 0 : index
    %c0_1 = arith.constant 0 : index
    %3 = vector.load %arg2[%c0, %c0_1] : memref<3x2xf32, #tpu.memory_space<vmem>>, vector<3x2xf32>
    %c0_2 = arith.constant 0 : index
    %c0_3 = arith.constant 0 : index
    %4 = vector.load %arg3[%c0_2, %c0_3] : memref<3x2xf32, #tpu.memory_space<vmem>>, vector<3x2xf32>
    %cst = arith.constant dense<0xFF800000> : vector<2xf32>
    %5 = vector.multi_reduction <maximumf>, %4, %cst [0] : vector<3x2xf32> to vector<2xf32>
    %6 = vector.shape_cast %5 : vector<2xf32> to vector<1x2xf32>
    %cst_4 = arith.constant dense<0xFF800000> : vector<2xf32>
    %7 = vector.multi_reduction <maximumf>, %3, %cst_4 [0] : vector<3x2xf32> to vector<2xf32>
    %8 = vector.shape_cast %7 : vector<2xf32> to vector<1x2xf32>
    %9 = vector.broadcast %6 : vector<1x2xf32> to vector<3x2xf32>
    %10 = arith.subf %4, %9 : vector<3x2xf32>
    %11 = vector.broadcast %8 : vector<1x2xf32> to vector<3x2xf32>
    %12 = arith.subf %3, %11 : vector<3x2xf32>
    %13 = math.exp %10 : vector<3x2xf32>
    %14 = math.exp %12 : vector<3x2xf32>
    %cst_5 = arith.constant dense<0.000000e+00> : vector<2xf32>
    %15 = vector.multi_reduction <add>, %13, %cst_5 [0] : vector<3x2xf32> to vector<2xf32>
    %16 = vector.shape_cast %15 : vector<2xf32> to vector<1x2xf32>
    %cst_6 = arith.constant dense<0.000000e+00> : vector<2xf32>
    %17 = vector.multi_reduction <add>, %14, %cst_6 [0] : vector<3x2xf32> to vector<2xf32>
    %18 = vector.shape_cast %17 : vector<2xf32> to vector<1x2xf32>
    %19 = math.log %16 : vector<1x2xf32>
    %20 = vector.broadcast %19 : vector<1x2xf32> to vector<3x2xf32>
    %21 = arith.subf %10, %20 : vector<3x2xf32>
    %22 = math.log %18 : vector<1x2xf32>
    %23 = vector.broadcast %22 : vector<1x2xf32> to vector<3x2xf32>
    %24 = arith.subf %12, %23 : vector<3x2xf32>
    %25 = arith.subf %21, %24 : vector<3x2xf32>
    %26 = arith.mulf %13, %25 : vector<3x2xf32>
    %cst_7 = arith.constant dense<0.000000e+00> : vector<2xf32>
    %27 = vector.multi_reduction <add>, %26, %cst_7 [0] : vector<3x2xf32> to vector<2xf32>
    %28 = vector.shape_cast %27 : vector<2xf32> to vector<1x2xf32>
    %29 = tpu.reciprocal %16 {approx = true} : vector<1x2xf32> -> vector<1x2xf32>
    %30 = arith.mulf %28, %29 : vector<1x2xf32>
    %c0_8 = arith.constant 0 : index
    %c0_9 = arith.constant 0 : index
    %31 = vector.load %arg5[%c0_8, %c0_9] : memref<1x2xf32, #tpu.memory_space<vmem>>, vector<1x2xf32>
    %32 = arith.addf %31, %30 : vector<1x2xf32>
    %c0_10 = arith.constant 0 : index
    %c0_11 = arith.constant 0 : index
    %33 = vector.load %arg5[%c0_10, %c0_11] : memref<1x2xf32, #tpu.memory_space<vmem>>, vector<1x2xf32>
    tpu.vector_store %arg5[%c0_10, %c0_11], %32 {strides = array<i32>} : memref<1x2xf32, #tpu.memory_space<vmem>>, vector<1x2xf32>,
    %c0_i32_12 = arith.constant 0 : i32
    %34 = arith.cmpi eq, %arg1, %c0_i32_12 : i32
    %35 = arith.extui %34 : i1 to i32
    %c0_i32_13 = arith.constant 0 : i32
    %36 = arith.cmpi ne, %35, %c0_i32_13 : i32
    scf.if %36 {
      %c0_14 = arith.constant 0 : index
      %c0_15 = arith.constant 0 : index
      %37 = vector.load %arg5[%c0_14, %c0_15] : memref<1x2xf32, #tpu.memory_space<vmem>>, vector<1x2xf32>
      %38 = vector.shape_cast %37 : vector<1x2xf32> to vector<1x1x2xf32>
      %cst_16 = arith.constant dense<0.000000e+00> : vector<1xf32>
      %39 = vector.multi_reduction <add>, %38, %cst_16 [1, 2] : vector<1x1x2xf32> to vector<1xf32>
      %40 = vector.shape_cast %39 : vector<1xf32> to vector<1x1x1xf32>
      %41 = vector.extract %40[0, 0, 0] : f32 from vector<1x1x1xf32>
      %42 = vector.broadcast %41 : f32 to vector<1x8x128xf32>
      %c0_17 = arith.constant 0 : index
      %c0_18 = arith.constant 0 : index
      %c0_19 = arith.constant 0 : index
      %43 = vector.load %arg4[%c0_17, %c0_18, %c0_19] : memref<1x8x128xf32, #tpu.memory_space<vmem>>, vector<1x8x128xf32>
      tpu.vector_store %arg4[%c0_17, %c0_18, %c0_19], %42 {strides = array<i32>} : memref<1x8x128xf32, #tpu.memory_space<vmem>>, vector<1x8x128xf32>,
    } else {
    }
    return
  }
  func.func @transform_0(%arg0: i32, %arg1: i32) -> (i32, i32) {
    %c1_i32 = arith.constant 1 : i32
    %0 = arith.muli %arg0, %c1_i32 : i32
    %1 = arith.addi %0, %arg1 : i32
    %c0_i32 = arith.constant 0 : i32
    %2 = arith.minsi %1, %c0_i32 : i32
    %c0_i32_0 = arith.constant 0 : i32
    %c0_i32_1 = arith.constant 0 : i32
    return %c0_i32_0, %2 : i32, i32
  }
  func.func @transform_1(%arg0: i32, %arg1: i32) -> (i32, i32) {
    %c1_i32 = arith.constant 1 : i32
    %0 = arith.muli %arg0, %c1_i32 : i32
    %1 = arith.addi %0, %arg1 : i32
    %c0_i32 = arith.constant 0 : i32
    %2 = arith.minsi %1, %c0_i32 : i32
    %c0_i32_0 = arith.constant 0 : i32
    %c0_i32_1 = arith.constant 0 : i32
    return %c0_i32_0, %2 : i32, i32
  }
  func.func @transform_2(%arg0: i32, %arg1: i32) -> (i32, i32, i32) {
    %c0_i32 = arith.constant 0 : i32
    %c0_i32_0 = arith.constant 0 : i32
    %c0_i32_1 = arith.constant 0 : i32
    return %arg0, %c0_i32, %c0_i32_0 : i32, i32, i32
  }
}

</mosaic_0001>

<bundles_post_ra>
// kernel: tpu_custom_call.1
= control target key start
LH: loop header
LB: loop body
LE: loop exit
PB: predicated region body
PF: predicated region fallthrough
CT: control target
= control target key end

     0   :  { %vm70_vm0 = vcmask 8192   ;;  %v210_v2 = vmov 0.0   ;;  %vm74_vm1 = vcmask 10240   ;;  %s253_s0 = inlined_call_operand.vmem [shape: f32[3,2], index: 0, kind: input, shape index: {}]   ;;  %s254_s1 = inlined_call_operand.vmem [shape: f32[3,2], index: 1, kind: input, shape index: {}]   ;;  %s255_s2 = inlined_call_operand.hbm [shape: f32[1,8,128], index: 2, kind: output, shape index: {}]  }
   0x1   :  { %v72_v0 = vld [vmem:[%s253_s0] sm:$0x7]  ;;  %71 = vst.msk [vmem:[#allocation2] sm:$0x1] %vm70_vm0, %v210_v2 }
   0x2   :  { %v73_v1 = vld [vmem:[%s254_s1] sm:$0x7] }
   0x3   :  { %7 = vsyncpa [#allocation4], 0  ;;  %v75_v3 = vsel %vm74_vm1, %v73_v1, -inf  ;;  %v82_v4 = vsel %vm74_vm1, %v72_v0, -inf  ;;  %s211_s0 = smov [#allocation3]  }
   0x4   :  { %v76_v5 = vrot.slane %v75_v3, 4  ;;  %v83_v6 = vrot.slane %v82_v4, 4  ;;  %s152_s1 = sshll.u32 %s211_s0, 4  ;;  %s153_s1 = int_to_ptr.vmem [resolvable:$true] %s152_s1 }
   0x5   :  { %s186_s14 = scalar_lea.vmem %s153_s1, 128  ;;  %p191_p1 = scmp.lt.s32.totalorder %s153_s1, %s153_s1 }
   0x6   :  { %v77_v7 = vmax.f32 %v75_v3, %v76_v5  ;;  %v84_v8 = vmax.f32 %v82_v4, %v83_v6  ;;  %p187_p0 = scmp.ne.s32.totalorder %s153_s1, %s186_s14  ;;  %p192_p2 = scmp.lt.s32.totalorder %s186_s14, %s186_s14 }
   0x8   :  { %v78_v9 = vrot.slane %v77_v7, 2  ;;  %v85_v10 = vrot.slane %v84_v8, 2  ;;  %v126_v53 = vld [vmem:[#allocation2] sm:$0x1]  ;;  %p193_p3 = por %p192_p2, %p191_p1 }
   0xa   :  { %v79_v11 = vmax.f32 %v77_v7, %v78_v9  ;;  %v86_v12 = vmax.f32 %v84_v8, %v85_v10  ;;  %p194_p4 = pnand %p193_p3, %p187_p0 }
   0xc   :  { %v80_v13 = vrot.slane %v79_v11, 1  ;;  %v87_v14 = vrot.slane %v86_v12, 1 }
   0xe   :  { %v81_v15 = vmax.f32 %v79_v11, %v80_v13  ;;  %v88_v16 = vmax.f32 %v86_v12, %v87_v14 }
  0x10   :  { %v89_v17 = vsub.f32 %v73_v1, %v81_v15  ;;  %v90_v18 = vsub.f32 %v72_v0, %v88_v16 }
  0x12   :  { %v91_v19 = vmul.f32 1.442695, %v89_v17  ;;  %v93_v20 = vmul.f32 1.442695, %v90_v18 }
  0x14   :  { %176 = vpow2.f32 %v91_v19 }
  0x15   :  { %178 = vpow2.f32 %v93_v20 }
  0x1e   :  { %v177_v21 = vpop.eup %176 }
  0x1f   :  { %v179_v22 = vpop.eup %178  ;;  %v95_v23 = vsel %vm74_vm1, %v177_v21, 0.0 }
  0x20   :  { %v96_v24 = vrot.slane %v95_v23, 4  ;;  %v102_v25 = vsel %vm74_vm1, %v179_v22, 0.0 }
  0x21   :  { %v103_v26 = vrot.slane %v102_v25, 4 }
  0x22   :  { %v97_v27 = vadd.f32 %v96_v24, %v95_v23 }
  0x23   :  { %v104_v28 = vadd.f32 %v103_v26, %v102_v25 }
  0x24   :  { %v98_v29 = vrot.slane %v97_v27, 2 }
  0x25   :  { %v105_v30 = vrot.slane %v104_v28, 2 }
  0x26   :  { %v99_v31 = vadd.f32 %v98_v29, %v97_v27 }
  0x27   :  { %v106_v32 = vadd.f32 %v105_v30, %v104_v28 }
  0x28   :  { %v100_v33 = vrot.slane %v99_v31, 1 }
  0x29   :  { %v107_v34 = vrot.slane %v106_v32, 1 }
  0x2a   :  { %v101_v35 = vadd.f32 %v100_v33, %v99_v31 }
  0x2b   :  { %v108_v36 = vadd.f32 %v107_v34, %v106_v32 }
  0x2c   :  { %180 = vlog2.f32 %v101_v35 }
  0x2d   :  { %182 = vlog2.f32 %v108_v36 }
  0x2e   :  { %184 = vrcp.f32 %v101_v35 }
  0x36   :  { %v181_v37 = vpop.eup %180 }
  0x37   :  { %v183_v38 = vpop.eup %182  ;;  %v110_v39 = vmul.f32 0.6931472, %v181_v37 }
  0x38   :  { %v113_v40 = vmul.f32 0.6931472, %v183_v38  ;;  %v185_v51 = vpop.eup %184 }
  0x39   :  { %v111_v41 = vsub.f32 %v89_v17, %v110_v39 }
  0x3a   :  { %v114_v42 = vsub.f32 %v90_v18, %v113_v40 }
  0x3c   :  { %v115_v43 = vsub.f32 %v111_v41, %v114_v42 }
  0x3e   :  { %v116_v44 = vmul.f32 %v177_v21, %v115_v43 }
  0x40   :  { %v117_v45 = vsel %vm74_vm1, %v116_v44, 0.0 }
  0x41   :  { %v118_v46 = vrot.slane %v117_v45, 4 }
  0x43   :  { %v119_v47 = vadd.f32 %v118_v46, %v117_v45 }
  0x45   :  { %v120_v48 = vrot.slane %v119_v47, 2 }
  0x47   :  { %v121_v49 = vadd.f32 %v120_v48, %v119_v47 }
  0x49   :  { %v122_v50 = vrot.slane %v121_v49, 1 }
  0x4b   :  { %v123_v52 = vadd.f32 %v122_v50, %v121_v49 }
  0x4d   :  { %v125_v54 = vmul.f32 %v185_v51, %v123_v52 }
  0x4f   :  { %v127_v55 = vadd.f32 %v126_v53, %v125_v54 }
  0x51   :  { %129 = vst.msk [vmem:[#allocation2] sm:$0x1] %vm70_vm0, %v127_v55 }
  0x58   :  { %v133_v56 = vld [vmem:[#allocation2] sm:$0x1] }
  0x59   :  { %v134_v57 = vsel %vm70_vm0, %v133_v56, 0.0 }
  0x5a   :  { %135 = vadd.xlane.f32.xlu0 %v134_v57 }
  0xe7   :  { %v136_v58 = vpop.xlane.xlu0 %135 }
  0xe8   :  { %v137_v59 = vrot.slane %v136_v58, 4 }
  0xea   :  { %v138_v60 = vadd.f32 %v137_v59, %v136_v58 }
  0xec   :  { %v139_v61 = vrot.slane %v138_v60, 2 }
  0xee   :  { %v140_v62 = vadd.f32 %v139_v61, %v138_v60 }
  0xf0   :  { %v141_v63 = vrot.slane %v140_v62, 1 }
  0xf2   :  { %v142_v0 = vadd.f32 %v141_v63, %v140_v62 }
  0xf4   :  { %172 = vpush %v142_v0 }
 0x125   :  { %s173_s13 = spop %172 }
 0x126   :  { %v144_v1 = vstv %s173_s13 }
 0x127   :  { %145 = vst [vmem:[#allocation3] sm:$0xff] %v144_v1 }
 0x128   :  { %197 = shalt.err (!%p194_p4)
}
 0x129   :  { %s198_s17 = scalar_lea.hbm %s255_s2, 128 }
 0x12a   :  { %p199_p5 = scmp.ne.s32.totalorder %s255_s2, %s198_s17  ;;  %p202_p6 = scmp.lt.u32.totalorder %s198_s17, %s255_s2 }
 0x12c   :  { %p204_p7 = pnand %p202_p6, %p199_p5 }
 0x12e   :  { %207 = shalt.err (!%p204_p7)
}
 0x12f   :  { %155 = dma.vmem_to_hbm [thread:$0]  %s153_s1, 128, %s255_s2, [#allocation4]  }
 0x130   :  { %208 = dma.done.wait [#allocation4], 128  }
 0x131   :  { %209 = vsyncadd [#allocation4], 4294967168 }
 0x132   :  { %159 = vsyncpa [#allocation4], 1 }

</bundles_post_ra>
